<compile_context>
chip_gen: v6e
topology: v6e:2x2x1
jax: 0.10.0
libtpu: 0.0.40
codegen_flags: <defaults>
</compile_context>

<pallas_src>
import math

import jax
import jax.numpy as jnp
from jax.experimental import pallas as pl
from jax.experimental.pallas import tpu as pltpu


def _round_up(x: int, m: int) -> int:
    return ((x + m - 1) // m) * m


def _sublane_multiple(dtype) -> int:
    """Sublane packing granularity for the second-to-last dim."""
    itemsize = jnp.dtype(dtype).itemsize
    if itemsize == 2:
        return 16
    if itemsize == 1:
        return 32
    return 8


def _default_config():
    """Generation-aware tile defaults: (tm, tn, tk, vmem_limit_bytes|None)."""
    try:
        kind = jax.devices()[0].device_kind.lower()
    except Exception:  # pragma: no cover - defensive
        kind = ""
    if "v6" in kind:
        # 128 MiB physical VMEM; needs ~656 FLOP/byte to go compute-bound.
        # Working set ~28 MiB double-buffered -> raise scoped VMEM limit.
        return 1024, 2048, 1024, 96 << 20
    if "v5 lite" in kind or "v5e" in kind or "v5lite" in kind:
        # ~240 FLOP/byte threshold; default scoped VMEM is only 16 MiB.
        return 512, 1024, 1024, 48 << 20
    # v7x (64 MiB physical VMEM, 3.2 TB/s HBM) and unknown generations:
    # ~10 MiB working set fits the default scoped VMEM, AI ~341 FLOP/byte.
    return 512, 1024, 1024, None


def _linear_cast_kernel(x_ref, wt_ref, b_ref, o_ref):
    # x_ref: (tm, tk)  wt_ref: (tk, tn)  b_ref: (1, tn) f32  o_ref: (tm, tn) f32
    k = pl.program_id(2)
    part = jnp.dot(x_ref[...], wt_ref[...], preferred_element_type=jnp.float32)

    @pl.when(k == 0)
    def _():
        o_ref[...] = part

    @pl.when(k > 0)
    def _():
        o_ref[...] += part

    @pl.when(k == pl.num_programs(2) - 1)
    def _():
        o_ref[...] += b_ref[...]


def _linear_cast_kernel_nobias(x_ref, wt_ref, o_ref):
    k = pl.program_id(2)
    part = jnp.dot(x_ref[...], wt_ref[...], preferred_element_type=jnp.float32)

    @pl.when(k == 0)
    def _():
        o_ref[...] = part

    @pl.when(k > 0)
    def _():
        o_ref[...] += part


def cast_output_to_float(x, weight, bias=None, *, tm=None, tn=None, tk=None):
    """Pallas equivalent of CastOutputToFloat.forward.

    x:      (..., in_features)
    weight: (out_features, in_features)
    bias:   (out_features,) or None
    returns (..., out_features) in float32
    """
    *lead, K = x.shape
    N, Kw = weight.shape
    assert K == Kw, "in_features mismatch"
    M = math.prod(lead) if lead else 1
    x2 = x.reshape(M, K)

    dtm, dtn, dtk, vmem_limit = _default_config()
    tm = dtm if tm is None else tm
    tn = dtn if tn is None else tn
    tk = dtk if tk is None else tk

    # Tile alignment: tm follows the x-dtype sublane multiple (and f32 out
    # needs 8); tn/tk lane-dense (multiples of 128).
    m_align = max(_sublane_multiple(x.dtype), 8)
    tm = min(tm, _round_up(M, m_align))
    tn = min(tn, _round_up(N, 128))
    tk = min(tk, _round_up(K, 128))

    # Pad to the tile grid (zero-padding is exact for a linear layer; the
    # zero-padded K remainder contributes nothing to the accumulation).
    Mp = _round_up(M, tm)
    Np = _round_up(N, tn)
    Kp = _round_up(K, tk)

    if (Mp, Kp) != (M, K):
        x2 = jnp.pad(x2, ((0, Mp - M), (0, Kp - K)))

    # Pre-transpose W once to (K, N) so the MXU sees an un-transposed RHS
    # (no per-K-step XLU transpose inside the kernel).
    # TODO(synk): cache the padded/pre-transposed weight outside the hot path
    # so this one extra HBM pass over W is not paid on every forward call.
    wT = weight.T
    if (Kp, Np) != (K, N):
        wT = jnp.pad(wT, ((0, Kp - K), (0, Np - N)))

    grid = (Mp // tm, Np // tn, Kp // tk)

    x_spec = pl.BlockSpec((tm, tk), lambda i, j, k: (i, k))
    w_spec = pl.BlockSpec((tk, tn), lambda i, j, k: (k, j))
    o_spec = pl.BlockSpec((tm, tn), lambda i, j, k: (i, j))
    out_shape = jax.ShapeDtypeStruct((Mp, Np), jnp.float32)

    cost = pl.CostEstimate(
        flops=2 * Mp * Np * Kp,
        bytes_accessed=(Mp * Kp * x2.dtype.itemsize
                        + Kp * Np * wT.dtype.itemsize
                        + Mp * Np * 4),
        transcendentals=0,
    )

    cp_kwargs = dict(dimension_semantics=("parallel", "parallel", "arbitrary"))
    if vmem_limit is not None:
        cp_kwargs["vmem_limit_bytes"] = vmem_limit
    cparams = pltpu.CompilerParams(**cp_kwargs)

    if bias is not None:
        # Hoist: cast to f32 once here; added only in the K-finalize step.
        b2 = bias.astype(jnp.float32).reshape(1, N)
        if Np != N:
            b2 = jnp.pad(b2, ((0, 0), (0, Np - N)))
        b_spec = pl.BlockSpec((1, tn), lambda i, j, k: (0, j))
        out = pl.pallas_call(
            _linear_cast_kernel,
            out_shape=out_shape,
            grid_spec=pltpu.PrefetchScalarGridSpec(
                num_scalar_prefetch=0,
                grid=grid,
                in_specs=[x_spec, w_spec, b_spec],
                out_specs=o_spec,
            ),
            compiler_params=cparams,
            cost_estimate=cost,
        )(x2, wT, b2)
    else:
        out = pl.pallas_call(
            _linear_cast_kernel_nobias,
            out_shape=out_shape,
            grid_spec=pltpu.PrefetchScalarGridSpec(
                num_scalar_prefetch=0,
                grid=grid,
                in_specs=[x_spec, w_spec],
                out_specs=o_spec,
            ),
            compiler_params=cparams,
            cost_estimate=cost,
        )(x2, wT)

    out = out[:M, :N]
    return out.reshape(*lead, N)


if __name__ == "__main__":
    key = jax.random.PRNGKey(0)
    kx, kw, kb, kx2, kw2 = jax.random.split(key, 5)

    # --- Test 1: wrapped nn.Linear(128, 256) with bias, bf16 params ---
    batch, seq, in_features, out_features = 2, 8, 128, 256
    x = jax.random.normal(kx, (batch, seq, in_features), dtype=jnp.float32).astype(jnp.bfloat16)
    w = (jax.random.normal(kw, (out_features, in_features), dtype=jnp.float32)
         * (1.0 / jnp.sqrt(in_features))).astype(jnp.bfloat16)
    b = jax.random.normal(kb, (out_features,), dtype=jnp.float32).astype(jnp.bfloat16)

    y = jax.block_until_ready(cast_output_to_float(x, w, b))
    y_ref = (jnp.einsum("bsk,nk->bsn",
                        x.astype(jnp.float32), w.astype(jnp.float32))
             + b.astype(jnp.float32))
    assert y.dtype == jnp.float32
    assert y.shape == (batch, seq, out_features)
    assert jnp.allclose(y, y_ref, atol=1e-2, rtol=1e-2)

    # --- Test 2: awkward, non-divisible shapes, no bias (exercises padding path) ---
    b2_, s2_, k2_, n2_ = 3, 5, 96, 200
    x2 = jax.random.normal(kx2, (b2_, s2_, k2_), dtype=jnp.float32).astype(jnp.bfloat16)
    w2 = (jax.random.normal(kw2, (n2_, k2_), dtype=jnp.float32)
          * (1.0 / jnp.sqrt(k2_))).astype(jnp.bfloat16)

    y2 = jax.block_until_ready(cast_output_to_float(x2, w2, None))
    y2_ref = jnp.einsum("bsk,nk->bsn",
                        x2.astype(jnp.float32), w2.astype(jnp.float32))
    assert y2.dtype == jnp.float32
    assert y2.shape == (b2_, s2_, n2_)
    assert jnp.allclose(y2, y2_ref, atol=1e-2, rtol=1e-2)

    print("KERNEL_OK")
</pallas_src>

<mosaic_0001>
module attributes {stable_mosaic.version = 11 : i64} {
  func.func @_linear_cast_kernel(%arg0: i32, %arg1: i32, %arg2: i32, %arg3: memref<16x128xbf16, #tpu.memory_space<vmem>>, %arg4: memref<128x256xbf16, #tpu.memory_space<vmem>>, %arg5: memref<1x256xf32, #tpu.memory_space<vmem>>, %arg6: memref<16x256xf32, #tpu.memory_space<vmem>>) attributes {dimension_semantics = [#tpu.dimension_semantics<parallel>, #tpu.dimension_semantics<parallel>, #tpu.dimension_semantics<arbitrary>], iteration_bounds = array<i64: 1, 1, 1>, scalar_prefetch = 0 : i64, scratch_operands = 0 : i64, tpu.core_type = #tpu.core_type<tc>, window_params = [{transform_indices = @transform_0, window_bounds = array<i64: 16, 128>}, {transform_indices = @transform_1, window_bounds = array<i64: 128, 256>}, {transform_indices = @transform_2, window_bounds = array<i64: 1, 256>}, {transform_indices = @transform_3, window_bounds = array<i64: 16, 256>}]} {
    %c0 = arith.constant 0 : index
    %c0_0 = arith.constant 0 : index
    %0 = vector.load %arg3[%c0, %c0_0] : memref<16x128xbf16, #tpu.memory_space<vmem>>, vector<16x128xbf16>
    %c0_1 = arith.constant 0 : index
    %c0_2 = arith.constant 0 : index
    %1 = vector.load %arg4[%c0_1, %c0_2] : memref<128x256xbf16, #tpu.memory_space<vmem>>, vector<128x256xbf16>
    %cst = arith.constant dense<0.000000e+00> : vector<16x256xf32>
    %2 = tpu.matmul %0, %1, %cst {dimension_numbers = #tpu.dot_dimension_numbers<[1], [0], [0], [1], [0, 0, 1, 1], [], []>} : vector<16x128xbf16>, vector<128x256xbf16>, vector<16x256xf32> -> vector<16x256xf32>
    %c0_i32 = arith.constant 0 : i32
    %3 = arith.cmpi eq, %arg2, %c0_i32 : i32
    %4 = arith.extui %3 : i1 to i32
    %c0_i32_3 = arith.constant 0 : i32
    %5 = arith.cmpi ne, %4, %c0_i32_3 : i32
    scf.if %5 {
      %c0_8 = arith.constant 0 : index
      %c0_9 = arith.constant 0 : index
      %12 = vector.load %arg6[%c0_8, %c0_9] : memref<16x256xf32, #tpu.memory_space<vmem>>, vector<16x256xf32>
      tpu.vector_store %arg6[%c0_8, %c0_9], %2 {strides = array<i32>} : memref<16x256xf32, #tpu.memory_space<vmem>>, vector<16x256xf32>,
    } else {
    }
    %c0_i32_4 = arith.constant 0 : i32
    %6 = arith.cmpi sgt, %arg2, %c0_i32_4 : i32
    %7 = arith.extui %6 : i1 to i32
    %c0_i32_5 = arith.constant 0 : i32
    %8 = arith.cmpi ne, %7, %c0_i32_5 : i32
    scf.if %8 {
      %c0_8 = arith.constant 0 : index
      %c0_9 = arith.constant 0 : index
      %12 = vector.load %arg6[%c0_8, %c0_9] : memref<16x256xf32, #tpu.memory_space<vmem>>, vector<16x256xf32>
      %13 = arith.addf %12, %2 : vector<16x256xf32>
      %c0_10 = arith.constant 0 : index
      %c0_11 = arith.constant 0 : index
      %14 = vector.load %arg6[%c0_10, %c0_11] : memref<16x256xf32, #tpu.memory_space<vmem>>, vector<16x256xf32>
      tpu.vector_store %arg6[%c0_10, %c0_11], %13 {strides = array<i32>} : memref<16x256xf32, #tpu.memory_space<vmem>>, vector<16x256xf32>,
    } else {
    }
    %c0_i32_6 = arith.constant 0 : i32
    %9 = arith.cmpi eq, %arg2, %c0_i32_6 : i32
    %10 = arith.extui %9 : i1 to i32
    %c0_i32_7 = arith.constant 0 : i32
    %11 = arith.cmpi ne, %10, %c0_i32_7 : i32
    scf.if %11 {
      %c0_8 = arith.constant 0 : index
      %c0_9 = arith.constant 0 : index
      %12 = vector.load %arg6[%c0_8, %c0_9] : memref<16x256xf32, #tpu.memory_space<vmem>>, vector<16x256xf32>
      %c0_10 = arith.constant 0 : index
      %c0_11 = arith.constant 0 : index
      %13 = vector.load %arg5[%c0_10, %c0_11] : memref<1x256xf32, #tpu.memory_space<vmem>>, vector<1x256xf32>
      %14 = vector.broadcast %13 : vector<1x256xf32> to vector<16x256xf32>
      %15 = arith.addf %12, %14 : vector<16x256xf32>
      %c0_12 = arith.constant 0 : index
      %c0_13 = arith.constant 0 : index
      %16 = vector.load %arg6[%c0_12, %c0_13] : memref<16x256xf32, #tpu.memory_space<vmem>>, vector<16x256xf32>
      tpu.vector_store %arg6[%c0_12, %c0_13], %15 {strides = array<i32>} : memref<16x256xf32, #tpu.memory_space<vmem>>, vector<16x256xf32>,
    } else {
    }
    return
  }
  func.func @transform_0(%arg0: i32, %arg1: i32, %arg2: i32) -> (i32, i32) {
    %c0_i32 = arith.constant 0 : i32
    return %arg0, %arg2 : i32, i32
  }
  func.func @transform_1(%arg0: i32, %arg1: i32, %arg2: i32) -> (i32, i32) {
    %c0_i32 = arith.constant 0 : i32
    return %arg2, %arg1 : i32, i32
  }
  func.func @transform_2(%arg0: i32, %arg1: i32, %arg2: i32) -> (i32, i32) {
    %c0_i32 = arith.constant 0 : i32
    %c0_i32_0 = arith.constant 0 : i32
    return %c0_i32, %arg1 : i32, i32
  }
  func.func @transform_3(%arg0: i32, %arg1: i32, %arg2: i32) -> (i32, i32) {
    %c0_i32 = arith.constant 0 : i32
    return %arg0, %arg1 : i32, i32
  }
}

</mosaic_0001>

<bundles_post_ra>
// kernel: tpu_custom_call.1
= control target key start
LH: loop header
LB: loop body
LE: loop exit
PB: predicated region body
PF: predicated region fallthrough
CT: control target
= control target key end

     0   :  { %8 = vsyncpa [#allocation3], 0  ;;  %s420_s0 = inlined_call_operand.hbm [shape: bf16[16,128], index: 0, kind: input, shape index: {}]   ;;  %s421_s1 = inlined_call_operand.hbm [shape: bf16[128,256], index: 1, kind: input, shape index: {}]   ;;  %s422_s2 = inlined_call_operand.vmem [shape: f32[1,256], index: 2, kind: input, shape index: {}]   ;;  %s423_s3 = inlined_call_operand.hbm [shape: f32[16,256], index: 3, kind: output, shape index: {}]  }
   0x1   :  { %9 = vsyncpa [#allocation6], 0 }
   0x2   :  { %10 = vsyncpa [#allocation4], 0  ;;  %s378_s12 = smov [#allocation2]  }
   0x3   :  { %s16_s13 = sshll.u32 %s378_s12, 4  ;;  %s17_s13 = int_to_ptr.vmem [resolvable:$true] %s16_s13 }
   0x4   :  { %s320_s14 = scalar_lea.vmem %s17_s13, 128  ;;  %p325_p1 = scmp.lt.s32.totalorder %s17_s13, %s17_s13 }
   0x5   :  { %p321_p0 = scmp.ne.s32.totalorder %s17_s13, %s320_s14  ;;  %p326_p2 = scmp.lt.s32.totalorder %s320_s14, %s320_s14 }
   0x7   :  { %p327_p3 = por %p326_p2, %p325_p1 }
   0x9   :  { %p328_p4 = pnand %p327_p3, %p321_p0 }
   0xb   :  { %331 = shalt.err (!%p328_p4)
}
   0xc   :  { %s379_s15 = smov 64   ;;  %s380_s16 = smov 4  }
   0xd   :  { %22 = dma.hbm_to_vmem [thread:$0]  %s420_s0, 128, %s17_s13, [#allocation3], %s379_s15, %s379_s15, %s380_s16  }
   0xe   :  { %s381_s19 = smov [#allocation5]  }
   0xf   :  { %s28_s20 = sshll.u32 %s381_s19, 4  ;;  %s29_s20 = int_to_ptr.vmem [resolvable:$true] %s28_s20 }
  0x10   :  { %s340_s21 = scalar_lea.vmem %s29_s20, 2048  ;;  %p345_p6 = scmp.lt.s32.totalorder %s29_s20, %s29_s20 }
  0x11   :  { %p341_p5 = scmp.ne.s32.totalorder %s29_s20, %s340_s21  ;;  %p346_p7 = scmp.lt.s32.totalorder %s340_s21, %s340_s21 }
  0x13   :  { %p347_p8 = por %p346_p7, %p345_p6 }
  0x15   :  { %p348_p9 = pnand %p347_p8, %p341_p5 }
  0x17   :  { %351 = shalt.err (!%p348_p9)
}
  0x18   :  { %s382_s22 = smov 128   ;;  %s383_s23 = smov 8  }
  0x19   :  { %34 = dma.hbm_to_vmem [thread:$0]  %s421_s1, 2048, %s29_s20, [#allocation6], %s382_s22, %s382_s22, %s383_s23  }
  0x1a   :  { %372 = dma.done.wait [#allocation3], 128  }
  0x1b   :  { %373 = vsyncadd [#allocation3], 4294967168 }
  0x1c   :  { %374 = dma.done.wait [#allocation6], 2048  }
  0x1d   :  { %375 = vsyncadd [#allocation6], 4294965248  ;;  %v384_v0 = vmov 0   ;;  %v287_v1 = vld [vmem:[#allocation5 + $0x74] ss:$8 sps:$4 sm:$0xff]   ;;  %v224_v18 = vlaneseq  ;;  %s385_s26 = smov [#allocation7]  }
  0x1e   :  { %180 = vmatprep.mubr.bf16.mxu0 %v384_v0  ;;  %v289_v2 = vld [vmem:[#allocation5 + $0x70] ss:$8 sps:$4 sm:$0xff]   ;;  %148 = vmatprep.subr.bf16.mxu0 %v287_v1  ;;  %v290_v3 = vld [vmem:[#allocation5 + $0x64] ss:$8 sps:$4 sm:$0xff]   ;;  %v292_v4 = vld [vmem:[#allocation5 + $0x60] ss:$8 sps:$4 sm:$0xff]  }
  0x1f   :  { %149 = vmatpush1.bf16.msra.mxu0 %v289_v2  ;;  %v293_v5 = vld [vmem:[#allocation5 + $0x54] ss:$8 sps:$4 sm:$0xff]   ;;  %v295_v6 = vld [vmem:[#allocation5 + $0x50] ss:$8 sps:$4 sm:$0xff]   ;;  %v296_v7 = vld [vmem:[#allocation5 + $0x44] ss:$8 sps:$4 sm:$0xff]  }
  0x20   :  { %150 = vmatprep.subr.bf16.mxu0 %v290_v3  ;;  %v298_v8 = vld [vmem:[#allocation5 + $0x40] ss:$8 sps:$4 sm:$0xff]   ;;  %v299_v9 = vld [vmem:[#allocation5 + $0x34] ss:$8 sps:$4 sm:$0xff]   ;;  %v301_v10 = vld [vmem:[#allocation5 + $0x30] ss:$8 sps:$4 sm:$0xff]  }
  0x21   :  { %v302_v11 = vld [vmem:[#allocation5 + $0x24] ss:$8 sps:$4 sm:$0xff]   ;;  %v304_v12 = vld [vmem:[#allocation5 + $0x20] ss:$8 sps:$4 sm:$0xff]   ;;  %v305_v13 = vld [vmem:[#allocation5 + $0x14] ss:$8 sps:$4 sm:$0xff]  }
  0x22   :  { %v307_v14 = vld [vmem:[#allocation5 + $0x10] ss:$8 sps:$4 sm:$0xff]   ;;  %v308_v15 = vld [vmem:[#allocation5 + $0x4] ss:$8 sps:$4 sm:$0xff]   ;;  %v310_v16 = vld [vmem:[#allocation5] ss:$8 sps:$4 sm:$0xff]  }
  0x23   :  { %151 = vmatpush1.bf16.msra.mxu0 %v292_v4  ;;  %v311_v17 = vld [vmem:[#allocation2] sm:$0xff]   ;;  %v225_v19 = vshrl.u32 %v224_v18, 7  ;;  %s247_s27 = sshll.u32 %s385_s26, 4  ;;  %s248_s27 = int_to_ptr.vmem [resolvable:$true] %s247_s27 }
  0x24   :  { %152 = vmatprep.subr.bf16.mxu0 %v293_v5  ;;  %v222_v21 = vld [vmem:[%s422_s2] sm:$0x3]  ;;  %s352_s28 = scalar_lea.vmem %s248_s27, 512  ;;  %p357_p11 = scmp.lt.s32.totalorder %s248_s27, %s248_s27 }
  0x25   :  { %v226_v20 = vsub.s32 0, %v225_v19  ;;  %v230_v22 = vsub.s32 1, %v225_v19  ;;  %p353_p10 = scmp.ne.s32.totalorder %s248_s27, %s352_s28  ;;  %p358_p12 = scmp.lt.s32.totalorder %s352_s28, %s352_s28 }
  0x27   :  { %153 = vmatpush1.bf16.msra.mxu0 %v295_v6  ;;  %v227_v23 = vrot.slane %v222_v21, %v226_v20  ;;  %v231_v24 = vrot.slane %v222_v21, %v230_v22  ;;  %p359_p13 = por %p358_p12, %p357_p11 }
  0x28   :  { %154 = vmatprep.subr.bf16.mxu0 %v296_v7 }
  0x29   :  { %p360_p0 = pnand %p359_p13, %p353_p10 }
  0x2b   :  { %155 = vmatpush1.bf16.msra.mxu0 %v298_v8 }
  0x2c   :  { %156 = vmatprep.subr.bf16.mxu0 %v299_v9 }
  0x2f   :  { %157 = vmatpush1.bf16.msra.mxu0 %v301_v10 }
  0x30   :  { %158 = vmatprep.subr.bf16.mxu0 %v302_v11 }
  0x33   :  { %159 = vmatpush1.bf16.msra.mxu0 %v304_v12 }
  0x34   :  { %160 = vmatprep.subr.bf16.mxu0 %v305_v13 }
  0x37   :  { %161 = vmatpush1.bf16.msra.mxu0 %v307_v14 }
  0x38   :  { %162 = vmatprep.subr.bf16.mxu0 %v308_v15 }
  0x3b   :  { %163 = vmatpush1.bf16.msra.mxu0 %v310_v16 }
  0x3e   :  { %181 = vmatmul.mubr.bf16.vlgmr.msra.gmra.mxu0 %v311_v17 }
  0xfe   :  { %v182_v25 = vpop.f32.mrf.mxu0 }
  0xff   :  { %v234_v26 = vadd.f32 %v227_v23, %v182_v25 }
 0x100   :  { %v184_v27 = vpop.f32.mrf.mxu0 }
 0x101   :  { %238 = vst [vmem:[#allocation7] sm:$0xff] %v234_v26  ;;  %v235_v28 = vadd.f32 %v231_v24, %v184_v27 }
 0x102   :  { %v186_v29 = vpop.f32.mrf.mxu0 }
 0x103   :  { %239 = vst [vmem:[#allocation7 + $0x8] sm:$0xff] %v235_v28  ;;  %v236_v30 = vadd.f32 %v227_v23, %v186_v29 }
 0x104   :  { %v188_v31 = vpop.f32.mrf.mxu0 }
 0x105   :  { %240 = vst [vmem:[#allocation7 + $0x10] sm:$0xff] %v236_v30  ;;  %v237_v32 = vadd.f32 %v231_v24, %v188_v31 }
 0x107   :  { %241 = vst [vmem:[#allocation7 + $0x18] sm:$0xff] %v237_v32 }
 0x108   :  { %363 = shalt.err (!%p360_p0)
}
 0x109   :  { %s386_s2 = smov 256   ;;  %s387_s29 = smov 16  }
 0x10a   :  { %253 = dma.vmem_to_hbm [thread:$0]  %s248_s27, 512, %s423_s3, [#allocation4], %s386_s2, %s386_s2, %s387_s29  }
 0x10b   :  { %376 = dma.done.wait [#allocation4], 512  }
 0x10c   :  { %377 = vsyncadd [#allocation4], 4294966784 }
 0x10d   :  { %257 = vsyncpa [#allocation3], 1 }
 0x10e   :  { %258 = vsyncpa [#allocation6], 1 }
 0x10f   :  { %259 = vsyncpa [#allocation4], 1 }

</bundles_post_ra>
